<compile_context>
chip_gen: v7x
topology: tpu7x:2x2x1
jax: 0.10.0
libtpu: 0.0.40
codegen_flags: <defaults>
</compile_context>

<pallas_src>
import jax
import jax.numpy as jnp
import numpy as np
from jax.experimental import pallas as pl
from jax.experimental.pallas import tpu as pltpu


# -----------------------------------------------------------------------------
# Parameter prep (plain JAX): BN folding, layout transforms, dtype casts
# -----------------------------------------------------------------------------
def _bn_fold(bn, eps=1e-5):
    gamma, beta, mean, var = bn
    scale = gamma / jnp.sqrt(var + eps)
    shift = beta - mean * scale
    return scale, shift


def _prepare_operands(params):
    s0, b0 = _bn_fold(params["bn0"])
    s1, b1 = _bn_fold(params["bn1"])
    s2, b2 = _bn_fold(params["bn2"])
    s3, b3 = _bn_fold(params["bn3"])
    P, Cin = params["conv1_w"].shape[:2]
    C4 = params["conv3_w"].shape[0]

    # conv1 (1x1) with bn0 (input side) and bn1 (output side) folded in, channel-major (out, in).
    w1 = params["conv1_w"].reshape(P, Cin)
    w1f = (w1 * s0[None, :]) * s1[:, None]
    b1f = (s1 * (w1 @ b0) + b1)[:, None]                          # (P, 1)

    # conv2 (3x3): 9 taps stacked along the contraction axis -> (P_out, 9*P_in); bn2 scale folded
    # into the output channel.  Column index = tap*P + in_channel, which MUST match the kernel's
    # stacked-tap row ordering (tap t = kh*3 + kw).
    w2 = jnp.transpose(params["conv2_w"], (2, 3, 0, 1)).reshape(9, P, P)   # [tap, out, in]
    w2f = w2 * s2[None, :, None]
    w2s = jnp.transpose(w2f, (1, 0, 2)).reshape(P, 9 * P)                  # (P, 9P)
    b2f = b2[:, None]                                                      # (P, 1)

    # conv3 (1x1) with bn3 folded, channel-major.
    w3 = params["conv3_w"].reshape(C4, P)
    w3f = w3 * s3[:, None]
    b3f = b3[:, None]                                             # (C4, 1)

    return dict(
        w1=w1f.astype(jnp.bfloat16), b1=b1f.astype(jnp.float32),  # bf16 MXU weights, f32 biases
        w2=w2s.astype(jnp.bfloat16), b2=b2f.astype(jnp.float32),
        w3=w3f.astype(jnp.bfloat16), b3=b3f.astype(jnp.float32),
        fc1_w_t=params["se_fc1_w"].T.astype(jnp.float32),         # (C4, R)
        fc1_b=params["se_fc1_b"][None, :].astype(jnp.float32),    # (1, R)
        fc2_w=params["se_fc2_w"].astype(jnp.float32),             # (C4, R)
        fc2_b=params["se_fc2_b"][:, None].astype(jnp.float32),    # (C4, 1)
        alphas=jnp.stack([params["prelu"][0],
                          params["se_prelu"][0]]).astype(jnp.float32),    # (2,) -> SMEM
    )


def _tap_masks(H, W):
    """(9, H*W) 0/1 validity masks for the pad=1 3x3 taps (tap t = kh*3 + kw)."""
    S = H * W
    h_idx = np.arange(S) // W
    w_idx = np.arange(S) % W
    masks = np.empty((9, S), np.float32)
    for t in range(9):
        dh, dw = t // 3 - 1, t % 3 - 1
        hh, ww = h_idx + dh, w_idx + dw
        masks[t] = ((hh >= 0) & (hh < H) & (ww >= 0) & (ww < W)).astype(np.float32)
    return jnp.asarray(masks)


def _full_spec(arr):
    nd = arr.ndim
    return pl.BlockSpec(arr.shape, lambda b, _nd=nd: (0,) * _nd)


# -----------------------------------------------------------------------------
# Fused forward pass
# -----------------------------------------------------------------------------
def ir_bottleneck_forward(x_nchw, params, stride=1):
    ops = _prepare_operands(params)
    B, Cin, H, W = x_nchw.shape
    P = ops["w1"].shape[0]
    C4 = ops["w3"].shape[0]
    R = ops["fc1_w_t"].shape[1]
    assert stride == 1 and Cin == C4, \
        "no-downsample path requires stride=1 and inplanes == planes*4"

    S = H * W
    x_cm = x_nchw.reshape(B, Cin, S).astype(jnp.bfloat16)         # channel-major, spatial on lanes
    masks = _tap_masks(H, W)                                      # (9, S) border masks

    def kernel(x_ref, w1_ref, b1_ref, w2_ref, b2_ref, w3_ref, b3_ref,
               fc1wt_ref, fc1b_ref, fc2w_ref, fc2b_ref, mask_ref, alphas_ref,
               o_ref, stk_ref):
        a = alphas_ref[0]             # shared PReLU alpha (scalar, from SMEM)
        sa = alphas_ref[1]            # SE PReLU alpha

        x_bf = x_ref[0]               # (Cin, S) bf16 — also the residual

        # --- conv1 (1x1, bn0/bn1 folded) + PReLU -----------------------------------------------
        y1 = jnp.dot(w1_ref[...], x_bf, preferred_element_type=jnp.float32)      # (P, S) f32
        y1 = y1 + b1_ref[...]
        y1 = jnp.where(y1 >= 0.0, y1, a * y1)

        # --- conv2 (3x3, pad=1, bn2 folded) as ONE stacked-K bf16 matmul ------------------------
        # Tap t reads y1 shifted by dh*W + dw: built in-register with an XLU lane roll, border /
        # row-wrap positions zeroed by the precomputed mask BEFORE the matmul (so the roll's
        # wrap-around garbage never contributes), then stored lane-aligned into the (9P, S)
        # staging scratch.  Every row of the scratch is rewritten each step, so no zero-fill.
        for t in range(9):
            dh, dw = t // 3 - 1, t % 3 - 1
            d = dh * W + dw
            tap = y1 if d == 0 else pltpu.roll(y1, (-d) % S, axis=1)
            if not (dh == 0 and dw == 0):
                tap = tap * mask_ref[t:t + 1, :]
            stk_ref[t * P:(t + 1) * P, :] = tap
        stacked = stk_ref[...].astype(jnp.bfloat16)                               # (9P, S)
        y2 = jnp.dot(w2_ref[...], stacked, preferred_element_type=jnp.float32)    # (P, S)
        y2 = y2 + b2_ref[...]
        y2 = jnp.where(y2 >= 0.0, y2, a * y2)

        # --- conv3 (1x1, bn3 folded) -------------------------------------------------------------
        z = jnp.dot(w3_ref[...], y2.astype(jnp.bfloat16),
                    preferred_element_type=jnp.float32) + b3_ref[...]             # (C4, S)

        # --- SE: global avg pool -> fc1 -> PReLU -> fc2 -> sigmoid gate (tiny -> VPU, no MXU) ---
        m = jnp.sum(z, axis=1, keepdims=True) * (1.0 / S)                         # (C4, 1)
        h = jnp.sum(fc1wt_ref[...] * m, axis=0, keepdims=True) + fc1b_ref[...]    # (1, R)
        h = jnp.where(h >= 0.0, h, sa * h)
        g = jnp.sum(fc2w_ref[...] * h, axis=1, keepdims=True) + fc2b_ref[...]     # (C4, 1)
        g = jax.nn.sigmoid(g)
        z = z * g

        # --- residual add (identity path) + final shared PReLU ----------------------------------
        z = z + x_bf.astype(jnp.float32)
        z = jnp.where(z >= 0.0, z, a * z)
        o_ref[0] = z.astype(o_ref.dtype)

    # Advisory cost estimate + a VMEM limit sized to actual need (+headroom).
    vmem_ops = [ops[k] for k in ("w1", "b1", "w2", "b2", "w3", "b3",
                                 "fc1_w_t", "fc1_b", "fc2_w", "fc2_b")] + [masks]
    flops = 2 * B * S * (Cin * P + 9 * P * P + P * C4) + 4 * B * C4 * R
    bytes_accessed = (int(x_cm.size) * 2 + B * S * C4 * 4
                      + sum(int(v.size) * v.dtype.itemsize for v in vmem_ops))
    cost = pl.CostEstimate(flops=flops, transcendentals=B * C4,
                           bytes_accessed=bytes_accessed)

    def _pad_bytes(v):                                             # (8,128)-tile padding floor
        return max(int(v.size) * v.dtype.itemsize, 4096)
    act_bytes = 2 * (Cin * S * 2 + C4 * S * 4)                     # double-buffered in/out blocks
    opr_bytes = 2 * sum(_pad_bytes(v) for v in vmem_ops)           # double-buffered operands
    scr_bytes = 9 * P * S * 4                                      # stacked-tap staging scratch
    vmem_limit = int(max(8 * 1024 * 1024, 2 * (act_bytes + opr_bytes + scr_bytes)))

    out = pl.pallas_call(
        kernel,
        out_shape=jax.ShapeDtypeStruct((B, C4, S), jnp.float32),
        grid=(B,),
        in_specs=[
            pl.BlockSpec((1, Cin, S), lambda b: (b, 0, 0)),
            _full_spec(ops["w1"]), _full_spec(ops["b1"]),
            _full_spec(ops["w2"]), _full_spec(ops["b2"]),
            _full_spec(ops["w3"]), _full_spec(ops["b3"]),
            _full_spec(ops["fc1_w_t"]), _full_spec(ops["fc1_b"]),
            _full_spec(ops["fc2_w"]), _full_spec(ops["fc2_b"]),
            _full_spec(masks),
            pl.BlockSpec(memory_space=pltpu.MemorySpace.SMEM),      # the two PReLU alphas
        ],
        out_specs=pl.BlockSpec((1, C4, S), lambda b: (b, 0, 0)),
        scratch_shapes=[pltpu.VMEM((9 * P, S), jnp.float32)],       # stacked-tap staging
        compiler_params=pltpu.CompilerParams(
            dimension_semantics=("parallel",),
            vmem_limit_bytes=vmem_limit),
        cost_estimate=cost,
    )(x_cm, ops["w1"], ops["b1"], ops["w2"], ops["b2"], ops["w3"], ops["b3"],
      ops["fc1_w_t"], ops["fc1_b"], ops["fc2_w"], ops["fc2_b"], masks, ops["alphas"])

    return out.reshape(B, C4, H, W)                                 # already NCHW


# -----------------------------------------------------------------------------
# Deterministic parameter initialization (torch-like layouts / shapes)
# -----------------------------------------------------------------------------
def init_params(key, inplanes, planes, expansion=4, reduction=16):
    c4 = planes * expansion
    r = max(c4 // reduction, 1)
    ks = jax.random.split(key, 16)

    def n(k, shape, scale=0.1):
        return (scale * jax.random.normal(k, shape)).astype(jnp.float32)

    def bn(k, c):
        k1, k2, k3, k4 = jax.random.split(k, 4)
        gamma = (1.0 + 0.1 * jax.random.normal(k1, (c,))).astype(jnp.float32)
        beta = (0.1 * jax.random.normal(k2, (c,))).astype(jnp.float32)
        mean = (0.1 * jax.random.normal(k3, (c,))).astype(jnp.float32)
        var = (0.9 + 0.1 * jnp.abs(jax.random.normal(k4, (c,)))).astype(jnp.float32)
        return gamma, beta, mean, var

    return dict(
        bn0=bn(ks[7], inplanes), bn1=bn(ks[8], planes),
        bn2=bn(ks[9], planes), bn3=bn(ks[10], c4),
        conv1_w=n(ks[0], (planes, inplanes, 1, 1)),
        conv2_w=n(ks[1], (planes, planes, 3, 3)),
        conv3_w=n(ks[2], (c4, planes, 1, 1)),
        prelu=jnp.array([0.25], jnp.float32),          # nn.PReLU() default (single shared alpha)
        se_prelu=jnp.array([0.25], jnp.float32),
        se_fc1_w=n(ks[3], (r, c4)), se_fc1_b=n(ks[4], (r,)),
        se_fc2_w=n(ks[5], (c4, r)), se_fc2_b=n(ks[6], (c4,)),
    )


# -----------------------------------------------------------------------------
# Pure-JAX f32 reference (original, unfused math) for the correctness check
# -----------------------------------------------------------------------------
def reference_forward(x_nchw, params):
    hi = jax.lax.Precision.HIGHEST
    B, Cin, H, W = x_nchw.shape
    P = params["conv1_w"].shape[0]
    C4 = params["conv3_w"].shape[0]
    x = jnp.transpose(x_nchw, (0, 2, 3, 1))
    s0, b0 = _bn_fold(params["bn0"])
    s1, b1 = _bn_fold(params["bn1"])
    s2, b2 = _bn_fold(params["bn2"])
    s3, b3 = _bn_fold(params["bn3"])
    a = params["prelu"][0]
    sa = params["se_prelu"][0]

    y = x * s0 + b0
    y = jnp.einsum("bhwc,pc->bhwp", y, params["conv1_w"].reshape(P, Cin), precision=hi)
    y = y * s1 + b1
    y = jnp.where(y >= 0, y, a * y)

    yp = jnp.pad(y, ((0, 0), (1, 1), (1, 1), (0, 0)))
    y2 = jnp.zeros((B, H, W, P), jnp.float32)
    for kh in range(3):
        for kw in range(3):
            y2 = y2 + jnp.einsum("bhwc,pc->bhwp", yp[:, kh:kh + H, kw:kw + W, :],
                                 params["conv2_w"][:, :, kh, kw], precision=hi)
    y2 = y2 * s2 + b2
    y2 = jnp.where(y2 >= 0, y2, a * y2)

    z = jnp.einsum("bhwp,cp->bhwc", y2, params["conv3_w"].reshape(C4, P), precision=hi)
    z = z * s3 + b3

    m = jnp.mean(z, axis=(1, 2))                                    # (B, C4)
    h = jnp.dot(m, params["se_fc1_w"].T, precision=hi) + params["se_fc1_b"]
    h = jnp.where(h >= 0, h, sa * h)
    g = jax.nn.sigmoid(jnp.dot(h, params["se_fc2_w"].T, precision=hi) + params["se_fc2_b"])
    z = z * g[:, None, None, :]
    z = z + x
    z = jnp.where(z >= 0, z, a * z)
    return jnp.transpose(z, (0, 3, 1, 2))


if __name__ == "__main__":
    # inplanes = planes * expansion so the identity residual (downsample=None, stride=1) is defined.
    B, inplanes, planes, H, W = 2, 16, 4, 16, 16

    key = jax.random.PRNGKey(0)
    kx, kp = jax.random.split(key)
    x = jax.random.normal(kx, (B, inplanes, H, W), dtype=jnp.float32)   # NCHW like PyTorch
    # Keep the test input exactly bf16-representable so the bf16-stored Pallas path and the
    # f32 reference consume identical input values (remaining diff = bf16 weight/activation
    # rounding on the conv path with f32 accumulation).
    x = x.astype(jnp.bfloat16).astype(jnp.float32)
    params = init_params(kp, inplanes, planes)

    out = jax.block_until_ready(ir_bottleneck_forward(x, params, stride=1))
    ref = jax.block_until_ready(reference_forward(x, params))

    np.testing.assert_allclose(np.asarray(out), np.asarray(ref), rtol=1e-2, atol=1e-2)
    assert out.shape == (B, planes * 4, H, W)

    print("KERNEL_OK")
</pallas_src>

<mosaic_0001>
module attributes {stable_mosaic.version = 11 : i64} {
  func.func @kernel(%arg0: i32, %arg1: memref<1x16x256xbf16, #tpu.memory_space<vmem>>, %arg2: memref<4x16xbf16, #tpu.memory_space<vmem>>, %arg3: memref<4x1xf32, #tpu.memory_space<vmem>>, %arg4: memref<4x36xbf16, #tpu.memory_space<vmem>>, %arg5: memref<4x1xf32, #tpu.memory_space<vmem>>, %arg6: memref<16x4xbf16, #tpu.memory_space<vmem>>, %arg7: memref<16x1xf32, #tpu.memory_space<vmem>>, %arg8: memref<16x1xf32, #tpu.memory_space<vmem>>, %arg9: memref<1x1xf32, #tpu.memory_space<vmem>>, %arg10: memref<16x1xf32, #tpu.memory_space<vmem>>, %arg11: memref<16x1xf32, #tpu.memory_space<vmem>>, %arg12: memref<9x256xf32, #tpu.memory_space<vmem>>, %arg13: memref<2xf32, #tpu.memory_space<smem>>, %arg14: memref<1x16x256xf32, #tpu.memory_space<vmem>>, %arg15: memref<36x256xf32, #tpu.memory_space<vmem>>) attributes {dimension_semantics = [#tpu.dimension_semantics<parallel>], iteration_bounds = array<i64: 2>, scalar_prefetch = 0 : i64, scratch_operands = 1 : i64, tpu.core_type = #tpu.core_type<tc>, window_params = [{transform_indices = @transform_0, window_bounds = array<i64: 1, 16, 256>}, {pipeline_mode = #tpu.pipeline_mode<synchronous>, transform_indices = @transform_1, window_bounds = array<i64: 4, 16>}, {pipeline_mode = #tpu.pipeline_mode<synchronous>, transform_indices = @transform_2, window_bounds = array<i64: 4, 1>}, {pipeline_mode = #tpu.pipeline_mode<synchronous>, transform_indices = @transform_3, window_bounds = array<i64: 4, 36>}, {pipeline_mode = #tpu.pipeline_mode<synchronous>, transform_indices = @transform_4, window_bounds = array<i64: 4, 1>}, {pipeline_mode = #tpu.pipeline_mode<synchronous>, transform_indices = @transform_5, window_bounds = array<i64: 16, 4>}, {pipeline_mode = #tpu.pipeline_mode<synchronous>, transform_indices = @transform_6, window_bounds = array<i64: 16, 1>}, {pipeline_mode = #tpu.pipeline_mode<synchronous>, transform_indices = @transform_7, window_bounds = array<i64: 16, 1>}, {pipeline_mode = #tpu.pipeline_mode<synchronous>, transform_indices = @transform_8, window_bounds = array<i64: 1, 1>}, {pipeline_mode = #tpu.pipeline_mode<synchronous>, transform_indices = @transform_9, window_bounds = array<i64: 16, 1>}, {pipeline_mode = #tpu.pipeline_mode<synchronous>, transform_indices = @transform_10, window_bounds = array<i64: 16, 1>}, {pipeline_mode = #tpu.pipeline_mode<synchronous>, transform_indices = @transform_11, window_bounds = array<i64: 9, 256>}, {transform_indices = @transform_12, window_bounds = array<i64: 2>}, {transform_indices = @transform_13, window_bounds = array<i64: 1, 16, 256>}]} {
    %c0 = arith.constant 0 : index
    %0 = memref.load %arg13[%c0] : memref<2xf32, #tpu.memory_space<smem>>
    %c1 = arith.constant 1 : index
    %1 = memref.load %arg13[%c1] : memref<2xf32, #tpu.memory_space<smem>>
    %c0_0 = arith.constant 0 : index
    %c0_1 = arith.constant 0 : index
    %c0_2 = arith.constant 0 : index
    %2 = vector.load %arg1[%c0_0, %c0_1, %c0_2] : memref<1x16x256xbf16, #tpu.memory_space<vmem>>, vector<1x16x256xbf16>
    %3 = vector.shape_cast %2 : vector<1x16x256xbf16> to vector<16x256xbf16>
    %c0_3 = arith.constant 0 : index
    %c0_4 = arith.constant 0 : index
    %4 = vector.load %arg2[%c0_3, %c0_4] : memref<4x16xbf16, #tpu.memory_space<vmem>>, vector<4x16xbf16>
    %cst = arith.constant dense<0.000000e+00> : vector<4x256xf32>
    %5 = tpu.matmul %4, %3, %cst {dimension_numbers = #tpu.dot_dimension_numbers<[1], [0], [0], [1], [0, 0, 1, 1], [], []>} : vector<4x16xbf16>, vector<16x256xbf16>, vector<4x256xf32> -> vector<4x256xf32>
    %c0_5 = arith.constant 0 : index
    %c0_6 = arith.constant 0 : index
    %6 = vector.load %arg3[%c0_5, %c0_6] : memref<4x1xf32, #tpu.memory_space<vmem>>, vector<4x1xf32>
    %7 = vector.broadcast %6 : vector<4x1xf32> to vector<4x256xf32>
    %8 = arith.addf %5, %7 : vector<4x256xf32>
    %cst_7 = arith.constant 0.000000e+00 : f32
    %9 = vector.broadcast %cst_7 : f32 to vector<4x256xf32>
    %10 = arith.cmpf oge, %8, %9 : vector<4x256xf32>
    %11 = vector.broadcast %0 : f32 to vector<4x256xf32>
    %12 = arith.mulf %11, %8 : vector<4x256xf32>
    %13 = arith.select %10, %8, %12 : vector<4x256xi1>, vector<4x256xf32>
    %c17_i32 = arith.constant 17 : i32
    %14 = tpu.dynamic_rotate %13 by %c17_i32 dim 1 : vector<4x256xf32>, i32 -> vector<4x256xf32>
    %c0_8 = arith.constant 0 : index
    %c0_9 = arith.constant 0 : index
    %15 = vector.load %arg12[%c0_8, %c0_9] : memref<9x256xf32, #tpu.memory_space<vmem>>, vector<1x256xf32>
    %16 = vector.broadcast %15 : vector<1x256xf32> to vector<4x256xf32>
    %17 = arith.mulf %14, %16 : vector<4x256xf32>
    %c0_10 = arith.constant 0 : index
    %c0_11 = arith.constant 0 : index
    %18 = vector.load %arg15[%c0_10, %c0_11] : memref<36x256xf32, #tpu.memory_space<vmem>>, vector<4x256xf32>
    tpu.vector_store %arg15[%c0_10, %c0_11], %17 {strides = array<i32>} : memref<36x256xf32, #tpu.memory_space<vmem>>, vector<4x256xf32>,
    %c16_i32 = arith.constant 16 : i32
    %19 = tpu.dynamic_rotate %13 by %c16_i32 dim 1 : vector<4x256xf32>, i32 -> vector<4x256xf32>
    %c1_12 = arith.constant 1 : index
    %c0_13 = arith.constant 0 : index
    %20 = vector.load %arg12[%c1_12, %c0_13] : memref<9x256xf32, #tpu.memory_space<vmem>>, vector<1x256xf32>
    %21 = vector.broadcast %20 : vector<1x256xf32> to vector<4x256xf32>
    %22 = arith.mulf %19, %21 : vector<4x256xf32>
    %c4 = arith.constant 4 : index
    %c0_14 = arith.constant 0 : index
    %23 = vector.load %arg15[%c4, %c0_14] : memref<36x256xf32, #tpu.memory_space<vmem>>, vector<4x256xf32>
    tpu.vector_store %arg15[%c4, %c0_14], %22 {strides = array<i32>} : memref<36x256xf32, #tpu.memory_space<vmem>>, vector<4x256xf32>,
    %c15_i32 = arith.constant 15 : i32
    %24 = tpu.dynamic_rotate %13 by %c15_i32 dim 1 : vector<4x256xf32>, i32 -> vector<4x256xf32>
    %c2 = arith.constant 2 : index
    %c0_15 = arith.constant 0 : index
    %25 = vector.load %arg12[%c2, %c0_15] : memref<9x256xf32, #tpu.memory_space<vmem>>, vector<1x256xf32>
    %26 = vector.broadcast %25 : vector<1x256xf32> to vector<4x256xf32>
    %27 = arith.mulf %24, %26 : vector<4x256xf32>
    %c8 = arith.constant 8 : index
    %c0_16 = arith.constant 0 : index
    %28 = vector.load %arg15[%c8, %c0_16] : memref<36x256xf32, #tpu.memory_space<vmem>>, vector<4x256xf32>
    tpu.vector_store %arg15[%c8, %c0_16], %27 {strides = array<i32>} : memref<36x256xf32, #tpu.memory_space<vmem>>, vector<4x256xf32>,
    %c1_i32 = arith.constant 1 : i32
    %29 = tpu.dynamic_rotate %13 by %c1_i32 dim 1 : vector<4x256xf32>, i32 -> vector<4x256xf32>
    %c3 = arith.constant 3 : index
    %c0_17 = arith.constant 0 : index
    %30 = vector.load %arg12[%c3, %c0_17] : memref<9x256xf32, #tpu.memory_space<vmem>>, vector<1x256xf32>
    %31 = vector.broadcast %30 : vector<1x256xf32> to vector<4x256xf32>
    %32 = arith.mulf %29, %31 : vector<4x256xf32>
    %c12 = arith.constant 12 : index
    %c0_18 = arith.constant 0 : index
    %33 = vector.load %arg15[%c12, %c0_18] : memref<36x256xf32, #tpu.memory_space<vmem>>, vector<4x256xf32>
    tpu.vector_store %arg15[%c12, %c0_18], %32 {strides = array<i32>} : memref<36x256xf32, #tpu.memory_space<vmem>>, vector<4x256xf32>,
    %c16 = arith.constant 16 : index
    %c0_19 = arith.constant 0 : index
    %34 = vector.load %arg15[%c16, %c0_19] : memref<36x256xf32, #tpu.memory_space<vmem>>, vector<4x256xf32>
    tpu.vector_store %arg15[%c16, %c0_19], %13 {strides = array<i32>} : memref<36x256xf32, #tpu.memory_space<vmem>>, vector<4x256xf32>,
    %c255_i32 = arith.constant 255 : i32
    %35 = tpu.dynamic_rotate %13 by %c255_i32 dim 1 : vector<4x256xf32>, i32 -> vector<4x256xf32>
    %c5 = arith.constant 5 : index
    %c0_20 = arith.constant 0 : index
    %36 = vector.load %arg12[%c5, %c0_20] : memref<9x256xf32, #tpu.memory_space<vmem>>, vector<1x256xf32>
    %37 = vector.broadcast %36 : vector<1x256xf32> to vector<4x256xf32>
    %38 = arith.mulf %35, %37 : vector<4x256xf32>
    %c20 = arith.constant 20 : index
    %c0_21 = arith.constant 0 : index
    %39 = vector.load %arg15[%c20, %c0_21] : memref<36x256xf32, #tpu.memory_space<vmem>>, vector<4x256xf32>
    tpu.vector_store %arg15[%c20, %c0_21], %38 {strides = array<i32>} : memref<36x256xf32, #tpu.memory_space<vmem>>, vector<4x256xf32>,
    %c241_i32 = arith.constant 241 : i32
    %40 = tpu.dynamic_rotate %13 by %c241_i32 dim 1 : vector<4x256xf32>, i32 -> vector<4x256xf32>
    %c6 = arith.constant 6 : index
    %c0_22 = arith.constant 0 : index
    %41 = vector.load %arg12[%c6, %c0_22] : memref<9x256xf32, #tpu.memory_space<vmem>>, vector<1x256xf32>
    %42 = vector.broadcast %41 : vector<1x256xf32> to vector<4x256xf32>
    %43 = arith.mulf %40, %42 : vector<4x256xf32>
    %c24 = arith.constant 24 : index
    %c0_23 = arith.constant 0 : index
    %44 = vector.load %arg15[%c24, %c0_23] : memref<36x256xf32, #tpu.memory_space<vmem>>, vector<4x256xf32>
    tpu.vector_store %arg15[%c24, %c0_23], %43 {strides = array<i32>} : memref<36x256xf32, #tpu.memory_space<vmem>>, vector<4x256xf32>,
    %c240_i32 = arith.constant 240 : i32
    %45 = tpu.dynamic_rotate %13 by %c240_i32 dim 1 : vector<4x256xf32>, i32 -> vector<4x256xf32>
    %c7 = arith.constant 7 : index
    %c0_24 = arith.constant 0 : index
    %46 = vector.load %arg12[%c7, %c0_24] : memref<9x256xf32, #tpu.memory_space<vmem>>, vector<1x256xf32>
    %47 = vector.broadcast %46 : vector<1x256xf32> to vector<4x256xf32>
    %48 = arith.mulf %45, %47 : vector<4x256xf32>
    %c28 = arith.constant 28 : index
    %c0_25 = arith.constant 0 : index
    %49 = vector.load %arg15[%c28, %c0_25] : memref<36x256xf32, #tpu.memory_space<vmem>>, vector<4x256xf32>
    tpu.vector_store %arg15[%c28, %c0_25], %48 {strides = array<i32>} : memref<36x256xf32, #tpu.memory_space<vmem>>, vector<4x256xf32>,
    %c239_i32 = arith.constant 239 : i32
    %50 = tpu.dynamic_rotate %13 by %c239_i32 dim 1 : vector<4x256xf32>, i32 -> vector<4x256xf32>
    %c8_26 = arith.constant 8 : index
    %c0_27 = arith.constant 0 : index
    %51 = vector.load %arg12[%c8_26, %c0_27] : memref<9x256xf32, #tpu.memory_space<vmem>>, vector<1x256xf32>
    %52 = vector.broadcast %51 : vector<1x256xf32> to vector<4x256xf32>
    %53 = arith.mulf %50, %52 : vector<4x256xf32>
    %c32 = arith.constant 32 : index
    %c0_28 = arith.constant 0 : index
    %54 = vector.load %arg15[%c32, %c0_28] : memref<36x256xf32, #tpu.memory_space<vmem>>, vector<4x256xf32>
    tpu.vector_store %arg15[%c32, %c0_28], %53 {strides = array<i32>} : memref<36x256xf32, #tpu.memory_space<vmem>>, vector<4x256xf32>,
    %c0_29 = arith.constant 0 : index
    %c0_30 = arith.constant 0 : index
    %55 = vector.load %arg15[%c0_29, %c0_30] : memref<36x256xf32, #tpu.memory_space<vmem>>, vector<36x256xf32>
    %56 = arith.truncf %55 : vector<36x256xf32> to vector<36x256xbf16>
    %c0_31 = arith.constant 0 : index
    %c0_32 = arith.constant 0 : index
    %57 = vector.load %arg4[%c0_31, %c0_32] : memref<4x36xbf16, #tpu.memory_space<vmem>>, vector<4x36xbf16>
    %cst_33 = arith.constant dense<0.000000e+00> : vector<4x256xf32>
    %58 = tpu.matmul %57, %56, %cst_33 {dimension_numbers = #tpu.dot_dimension_numbers<[1], [0], [0], [1], [0, 0, 1, 1], [], []>} : vector<4x36xbf16>, vector<36x256xbf16>, vector<4x256xf32> -> vector<4x256xf32>
    %c0_34 = arith.constant 0 : index
    %c0_35 = arith.constant 0 : index
    %59 = vector.load %arg5[%c0_34, %c0_35] : memref<4x1xf32, #tpu.memory_space<vmem>>, vector<4x1xf32>
    %60 = vector.broadcast %59 : vector<4x1xf32> to vector<4x256xf32>
    %61 = arith.addf %58, %60 : vector<4x256xf32>
    %cst_36 = arith.constant 0.000000e+00 : f32
    %62 = vector.broadcast %cst_36 : f32 to vector<4x256xf32>
    %63 = arith.cmpf oge, %61, %62 : vector<4x256xf32>
    %64 = vector.broadcast %0 : f32 to vector<4x256xf32>
    %65 = arith.mulf %64, %61 : vector<4x256xf32>
    %66 = arith.select %63, %61, %65 : vector<4x256xi1>, vector<4x256xf32>
    %c0_37 = arith.constant 0 : index
    %c0_38 = arith.constant 0 : index
    %67 = vector.load %arg6[%c0_37, %c0_38] : memref<16x4xbf16, #tpu.memory_space<vmem>>, vector<16x4xbf16>
    %68 = arith.truncf %66 : vector<4x256xf32> to vector<4x256xbf16>
    %cst_39 = arith.constant dense<0.000000e+00> : vector<16x256xf32>
    %69 = tpu.matmul %67, %68, %cst_39 {dimension_numbers = #tpu.dot_dimension_numbers<[1], [0], [0], [1], [0, 0, 1, 1], [], []>} : vector<16x4xbf16>, vector<4x256xbf16>, vector<16x256xf32> -> vector<16x256xf32>
    %c0_40 = arith.constant 0 : index
    %c0_41 = arith.constant 0 : index
    %70 = vector.load %arg7[%c0_40, %c0_41] : memref<16x1xf32, #tpu.memory_space<vmem>>, vector<16x1xf32>
    %71 = vector.broadcast %70 : vector<16x1xf32> to vector<16x256xf32>
    %72 = arith.addf %69, %71 : vector<16x256xf32>
    %cst_42 = arith.constant dense<0.000000e+00> : vector<16xf32>
    %73 = vector.multi_reduction <add>, %72, %cst_42 [1] : vector<16x256xf32> to vector<16xf32>
    %74 = vector.shape_cast %73 : vector<16xf32> to vector<16x1xf32>
    %cst_43 = arith.constant 3.906250e-03 : f32
    %75 = vector.broadcast %cst_43 : f32 to vector<16x1xf32>
    %76 = arith.mulf %74, %75 : vector<16x1xf32>
    %c0_44 = arith.constant 0 : index
    %c0_45 = arith.constant 0 : index
    %77 = vector.load %arg8[%c0_44, %c0_45] : memref<16x1xf32, #tpu.memory_space<vmem>>, vector<16x1xf32>
    %78 = arith.mulf %77, %76 : vector<16x1xf32>
    %cst_46 = arith.constant dense<0.000000e+00> : vector<1xf32>
    %79 = vector.multi_reduction <add>, %78, %cst_46 [0] : vector<16x1xf32> to vector<1xf32>
    %80 = vector.shape_cast %79 : vector<1xf32> to vector<1x1xf32>
    %c0_47 = arith.constant 0 : index
    %c0_48 = arith.constant 0 : index
    %81 = vector.load %arg9[%c0_47, %c0_48] : memref<1x1xf32, #tpu.memory_space<vmem>>, vector<1x1xf32>
    %82 = arith.addf %80, %81 : vector<1x1xf32>
    %cst_49 = arith.constant 0.000000e+00 : f32
    %83 = vector.broadcast %cst_49 : f32 to vector<1x1xf32>
    %84 = arith.cmpf oge, %82, %83 : vector<1x1xf32>
    %85 = vector.broadcast %1 : f32 to vector<1x1xf32>
    %86 = arith.mulf %85, %82 : vector<1x1xf32>
    %87 = arith.select %84, %82, %86 : vector<1x1xi1>, vector<1x1xf32>
    %c0_50 = arith.constant 0 : index
    %c0_51 = arith.constant 0 : index
    %88 = vector.load %arg10[%c0_50, %c0_51] : memref<16x1xf32, #tpu.memory_space<vmem>>, vector<16x1xf32>
    %89 = vector.broadcast %87 : vector<1x1xf32> to vector<16x1xf32>
    %90 = arith.mulf %88, %89 : vector<16x1xf32>
    %cst_52 = arith.constant dense<0.000000e+00> : vector<16xf32>
    %91 = vector.multi_reduction <add>, %90, %cst_52 [1] : vector<16x1xf32> to vector<16xf32>
    %92 = vector.shape_cast %91 : vector<16xf32> to vector<16x1xf32>
    %c0_53 = arith.constant 0 : index
    %c0_54 = arith.constant 0 : index
    %93 = vector.load %arg11[%c0_53, %c0_54] : memref<16x1xf32, #tpu.memory_space<vmem>>, vector<16x1xf32>
    %94 = arith.addf %92, %93 : vector<16x1xf32>
    %95 = arith.negf %94 : vector<16x1xf32>
    %96 = math.exp %95 : vector<16x1xf32>
    %cst_55 = arith.constant 1.000000e+00 : f32
    %97 = vector.broadcast %cst_55 : f32 to vector<16x1xf32>
    %98 = arith.addf %97, %96 : vector<16x1xf32>
    %99 = arith.divf %97, %98 : vector<16x1xf32>
    %100 = vector.broadcast %99 : vector<16x1xf32> to vector<16x256xf32>
    %101 = arith.mulf %72, %100 : vector<16x256xf32>
    %102 = arith.extf %3 : vector<16x256xbf16> to vector<16x256xf32>
    %103 = arith.addf %101, %102 : vector<16x256xf32>
    %cst_56 = arith.constant 0.000000e+00 : f32
    %104 = vector.broadcast %cst_56 : f32 to vector<16x256xf32>
    %105 = arith.cmpf oge, %103, %104 : vector<16x256xf32>
    %106 = vector.broadcast %0 : f32 to vector<16x256xf32>
    %107 = arith.mulf %106, %103 : vector<16x256xf32>
    %108 = arith.select %105, %103, %107 : vector<16x256xi1>, vector<16x256xf32>
    %c0_57 = arith.constant 0 : index
    %c0_58 = arith.constant 0 : index
    %c0_59 = arith.constant 0 : index
    %109 = vector.load %arg14[%c0_57, %c0_58, %c0_59] : memref<1x16x256xf32, #tpu.memory_space<vmem>>, vector<1x16x256xf32>
    %110 = vector.shape_cast %109 : vector<1x16x256xf32> to vector<16x256xf32>
    %111 = vector.shape_cast %108 : vector<16x256xf32> to vector<1x16x256xf32>
    tpu.vector_store %arg14[%c0_57, %c0_58, %c0_59], %111 {strides = array<i32>} : memref<1x16x256xf32, #tpu.memory_space<vmem>>, vector<1x16x256xf32>,
    return
  }
  func.func @transform_0(%arg0: i32) -> (i32, i32, i32) {
    %c0_i32 = arith.constant 0 : i32
    %c0_i32_0 = arith.constant 0 : i32
    %c0_i32_1 = arith.constant 0 : i32
    return %arg0, %c0_i32, %c0_i32_0 : i32, i32, i32
  }
  func.func @transform_1(%arg0: i32) -> (i32, i32) {
    %c0_i32 = arith.constant 0 : i32
    %c0_i32_0 = arith.constant 0 : i32
    %c0_i32_1 = arith.constant 0 : i32
    return %c0_i32, %c0_i32_0 : i32, i32
  }
  func.func @transform_2(%arg0: i32) -> (i32, i32) {
    %c0_i32 = arith.constant 0 : i32
    %c0_i32_0 = arith.constant 0 : i32
    %c0_i32_1 = arith.constant 0 : i32
    return %c0_i32, %c0_i32_0 : i32, i32
  }
  func.func @transform_3(%arg0: i32) -> (i32, i32) {
    %c0_i32 = arith.constant 0 : i32
    %c0_i32_0 = arith.constant 0 : i32
    %c0_i32_1 = arith.constant 0 : i32
    return %c0_i32, %c0_i32_0 : i32, i32
  }
  func.func @transform_4(%arg0: i32) -> (i32, i32) {
    %c0_i32 = arith.constant 0 : i32
    %c0_i32_0 = arith.constant 0 : i32
    %c0_i32_1 = arith.constant 0 : i32
    return %c0_i32, %c0_i32_0 : i32, i32
  }
  func.func @transform_5(%arg0: i32) -> (i32, i32) {
    %c0_i32 = arith.constant 0 : i32
    %c0_i32_0 = arith.constant 0 : i32
    %c0_i32_1 = arith.constant 0 : i32
    return %c0_i32, %c0_i32_0 : i32, i32
  }
  func.func @transform_6(%arg0: i32) -> (i32, i32) {
    %c0_i32 = arith.constant 0 : i32
    %c0_i32_0 = arith.constant 0 : i32
    %c0_i32_1 = arith.constant 0 : i32
    return %c0_i32, %c0_i32_0 : i32, i32
  }
  func.func @transform_7(%arg0: i32) -> (i32, i32) {
    %c0_i32 = arith.constant 0 : i32
    %c0_i32_0 = arith.constant 0 : i32
    %c0_i32_1 = arith.constant 0 : i32
    return %c0_i32, %c0_i32_0 : i32, i32
  }
  func.func @transform_8(%arg0: i32) -> (i32, i32) {
    %c0_i32 = arith.constant 0 : i32
    %c0_i32_0 = arith.constant 0 : i32
    %c0_i32_1 = arith.constant 0 : i32
    return %c0_i32, %c0_i32_0 : i32, i32
  }
  func.func @transform_9(%arg0: i32) -> (i32, i32) {
    %c0_i32 = arith.constant 0 : i32
    %c0_i32_0 = arith.constant 0 : i32
    %c0_i32_1 = arith.constant 0 : i32
    return %c0_i32, %c0_i32_0 : i32, i32
  }
  func.func @transform_10(%arg0: i32) -> (i32, i32) {
    %c0_i32 = arith.constant 0 : i32
    %c0_i32_0 = arith.constant 0 : i32
    %c0_i32_1 = arith.constant 0 : i32
    return %c0_i32, %c0_i32_0 : i32, i32
  }
  func.func @transform_11(%arg0: i32) -> (i32, i32) {
    %c0_i32 = arith.constant 0 : i32
    %c0_i32_0 = arith.constant 0 : i32
    %c0_i32_1 = arith.constant 0 : i32
    return %c0_i32, %c0_i32_0 : i32, i32
  }
  func.func @transform_12(%arg0: i32) -> i32 {
    %c0_i32 = arith.constant 0 : i32
    %c0_i32_0 = arith.constant 0 : i32
    return %c0_i32 : i32
  }
  func.func @transform_13(%arg0: i32) -> (i32, i32, i32) {
    %c0_i32 = arith.constant 0 : i32
    %c0_i32_0 = arith.constant 0 : i32
    %c0_i32_1 = arith.constant 0 : i32
    return %arg0, %c0_i32, %c0_i32_0 : i32, i32, i32
  }
}

</mosaic_0001>

<bundles_post_ra>
// kernel: tpu_custom_call.1
= control target key start
LH: loop header
LB: loop body
LE: loop exit
PB: predicated region body
PF: predicated region fallthrough
CT: control target
= control target key end

     0   :  { %s1638_s0 = inlined_call_operand.vmem [shape: bf16[2,16,256], index: 0, kind: input, shape index: {}]   ;;  %s1639_s1 = inlined_call_operand.vmem [shape: bf16[4,16], index: 1, kind: input, shape index: {}]   ;;  %s1640_s2 = inlined_call_operand.vmem [shape: f32[4,1], index: 2, kind: input, shape index: {}]   ;;  %s1641_s3 = inlined_call_operand.vmem [shape: bf16[4,36], index: 3, kind: input, shape index: {}]   ;;  %s1642_s4 = inlined_call_operand.vmem [shape: f32[4,1], index: 4, kind: input, shape index: {}]   ;;  %s1643_s5 = inlined_call_operand.vmem [shape: bf16[16,4], index: 5, kind: input, shape index: {}]   ;;  %s1644_s6 = inlined_call_operand.vmem [shape: f32[16,1], index: 6, kind: input, shape index: {}]   ;;  %s1645_s7 = inlined_call_operand.vmem [shape: f32[16,1], index: 7, kind: input, shape index: {}]   ;;  %s1646_s8 = inlined_call_operand.<no memory space> [shape: f32[1,1], index: 8, kind: input, shape index: {}]   ;;  %s1647_s9 = inlined_call_operand.vmem [shape: f32[16,1], index: 9, kind: input, shape index: {}]   ;;  %s1648_s10 = inlined_call_operand.vmem [shape: f32[16,1], index: 10, kind: input, shape index: {}]   ;;  %s1649_s11 = inlined_call_operand.vmem [shape: f32[9,256], index: 11, kind: input, shape index: {}]   ;;  %s1650_s12 = inlined_call_operand.vmem [shape: f32[2], index: 12, kind: input, shape index: {}]   ;;  %s1651_s13 = inlined_call_operand.hbm [shape: f32[2,16,256], index: 13, kind: output, shape index: {}]  }
   0x1   :  { %1653 = sst [smem:[#allocation10_spill]] %s1638_s0  ;;  %v18_v0 = vstv %s1646_s8 }
   0x2   :  { %19 = vst [vmem:[#allocation3] sm:$0x1] %v18_v0 }
   0x3   :  { %20 = vsyncpa [#allocation6], 0 }
   0x4   :  { %21 = vsyncpa [#allocation5], 0 }
   0x5   :  { %23 = vsyncpa [#allocation5 + $0x1], 0  ;;  %s1358_s27 = smov 0   ;;  %s1360_s28 = smov 0  }
   0x6   :  { %s1362_s29 = smov 0   ;;  %s1364_s30 = smov 0  }
   0x7 LB: > { %s1379_s8 = sadd.s32 4294967295, %s1271_s30   ;;  %s1083_s14 = sadd.s32 4294967294, %s1271_s30   ;;  %s1271_s30 = sphi %s1364_s30, %s1662_s30   ;;  %s1267_s29 = sphi %s1362_s29, %s1661_s29   ;;  %s1263_s28 = sphi %s1360_s28, %s1660_s28   ;;  %s1259_s27 = sphi %s1358_s27, %s1659_s27  }
   0x8   : > { %s1383_s15 = sadd.s32 1, %s1271_s30   ;;  %s314_s16 = sadd.s32 1, %s1267_s29 }
   0x9   : > { %s311_s17 = ssub.s32 %s1271_s30, %s1383_s15  ;;  %p324_p0 = scmp.ne.s32.totalorder %s1267_s29, %s1263_s28 }
   0xa   : > { %p312_p1 = scmp.eq.s32.totalorder %s311_s17, 0  ;;  %p325_p2 = scmp.eq.s32.totalorder %s1379_s8, 1 }
   0xb   : > { %p330_p3 = scmp.ne.s32.totalorder %s1263_s28, %s1259_s27  ;;  %p331_p4 = scmp.eq.s32.totalorder %s1083_s14, 1 }
   0xc   : > { %s1394_s18 = scalar_select %p312_p1, %s1267_s29, %s314_s16  }
   0xd   : > { %p1396_p5 = por %p325_p2, %p324_p0  ;;  %p1400_p6 = por %p331_p4, %p330_p3 }
   0xe   : > { %p1084_p7 = scmp.ge.s32.totalorder %s1271_s30, 1  ;;  %p338_p8 = scmp.lt.s32.totalorder %s1271_s30, 3 }
   0xf   : > { %p1131_p9 = scmp.eq.s32.totalorder %s1379_s8, 0  ;;  %s384_s24 = sshll.u32 %s1650_s12, 4  ;;  %s385_s24 = int_to_ptr.vmem [resolvable:$true] %s384_s24 }
  0x10   : > { %p1407_p10 = pnand %p1084_p7, %p338_p8  ;;  %s1190_s25 = scalar_lea.vmem %s385_s24, 16 }
  0x11   : > { %p1191_p13 = scmp.ne.s32.totalorder %s385_s24, %s1190_s25  ;;  %p1198_p3 = scmp.lt.s32.totalorder %s385_s24, %s385_s24 }
  0x12   : > { %p1123_p11 = pneg %p1407_p10  ;;  %p1199_p4 = scmp.lt.s32.totalorder %s1190_s25, %s1190_s25 }
  0x14   : > { %p1124_p12 = pnand %p1131_p9, %p1123_p11  ;;  %p1200_p7 = por %p1199_p4, %p1198_p3 }
  0x16   : > { %p1192_p0 = pneg %p1124_p12 }
  0x18   : > { %p1193_p1 = pnand %p1192_p0, %p1191_p13 }
  0x1a   : > { %p1194_p2 = pneg %p1193_p1 }
  0x1c   : > { %p1201_p8 = pnand %p1200_p7, %p1194_p2 }
  0x1e   : > { %1204 = shalt.err (!%p1201_p8)
}
  0x1f   : > { %s1273_s26 = smov [#allocation4]   ;;  %405 = sbr.rel (%p1407_p10) target bundleno = 1224 (0x4c8), region = 72 }
  0x20   : > { %1126 = dma.vmem_to_smem (!%p1124_p12), %s385_s24, 16, %s1273_s26, [#allocation6]  }
  0x26   : > { %1250 = dma.done.wait (%p1131_p9), [#allocation6], 16  }
  0x27   : > { %1252 = vsyncadd (%p1131_p9), [#allocation6], 4294967280 }
  0x28   : > { %411 = sfence }
  0x29   : > { %p450_p11 = scmp.lt.s32.totalorder %s1379_s8, 1  ;;  %v1274_v1 = vmov 0   ;;  %v461_v2 = vld [vmem:[%s1640_s2] sm:$0xf]  ;;  %s1657_s0 = sld [smem:[#allocation10_spill]]  ;;  %vm477_vm0 = vcmask 130048   ;;  %v533_v23 = vlaneseq }
  0x2a   : > { %513 = vmatprep.mubr.bf16.mxu0 %v1274_v1  ;;  %1177 = vset.pattern.permute.xlu0 %v1274_v1  ;;  %v460_v7 = vld [vmem:[%s1639_s1] sm:$0x3]  ;;  %s456_s14 = sld [smem:[#allocation4]]  ;;  %s1275_s16 = smov 1   ;;  %v834_v22 = vld [vmem:[%s1644_s6 + $0x8] sm:$0xff]  ;;  %vm775_vm11 = vcmask 1041408  }
  0x2b   : > { %s451_s17 = scalar_select %p450_p11, %s1379_s8, 1  ;;  %464 = vperm.xlu0 %1177, %v461_v2   ;;  %814 = vmatprep.mubr.bf16.mxu1 %v1274_v1  ;;  %v833_v20 = vld [vmem:[%s1644_s6] sm:$0xff]  ;;  %v541_v24 = vshrl.u32 %v533_v23, 7  ;;  %v1458_v25 = vand.u32 127, %v533_v23  ;;  %vm771_vm12 = vcmask 293888   ;;  %vm850_vm15 = vcmask 31744  }
  0x2c   : > { %1178 = vset.pattern.permute.xlu1 %v1274_v1  ;;  %s1278_s22 = smov 15   ;;  %s1279_s23 = smov 127   ;;  %v765_v21 = vld [vmem:[%s1642_s4] sm:$0xf] }
  0x2d   : > { %s1115_s21 = sshll.u32 %s451_s17, 4  ;;  %s1652_s17 = smov 16   ;;  %v1460_v26 = vsub.s32 0, %v541_v24  ;;  %v1462_v27 = vsub.s32 1, %v541_v24  ;;  %vm612_vm3 = vcmp.lt.s32.totalorder %v1458_v25, 1  ;;  %vm535_vm4 = vcmp.lt.s32.totalorder %v1458_v25, 17 }
  0x2e   : > { %s1281_s25 = smov 113   ;;  %s1282_s26 = smov 111   ;;  %v1098_v28 = vld [vmem:[%s1649_s11 + $0x3] ss:$8 sm:$0x3]  ;;  %vm588_vm5 = vcmp.lt.s32.totalorder %v1458_v25, 15 }
  0x2f   : > { %s454_s24 = scalar_lea.vmem %s1657_s0, %s1115_s21  ;;  %s1277_s21 = smov 17   ;;  %v621_v31 = vrot.slane %v1098_v28, %v1460_v26  ;;  %v625_v32 = vrot.slane %v1098_v28, %v1462_v27  ;;  %v538_v33 = vld [vmem:[%s1649_s11] ss:$8 sm:$0x3]  ;;  %vm558_vm6 = vcmp.lt.s32.totalorder %v1458_v25, 16  ;;  %vm644_vm7 = vcmp.lt.s32.totalorder %v1458_v25, 127 }
  0x30   : > { %v1432_v3 = vld [vmem:[%s454_s24] sm:$0xff]  ;;  %v1434_v4 = vld [vmem:[%s454_s24 + $0x8] sm:$0xff]  ;;  %v1443_v10 = vstv %s456_s14  ;;  %s1280_s24 = smov 112   ;;  %v543_v40 = vrot.slane %v538_v33, %v1460_v26  ;;  %v547_v41 = vrot.slane %v538_v33, %v1462_v27  ;;  %vm698_vm8 = vcmp.lt.s32.totalorder %v1458_v25, 112 }
  0x31   : > { %v1094_v5 = vcombine.high %v1432_v3, %v1434_v4  ;;  %v1093_v6 = vcombine.low %v1432_v3, %v1434_v4  ;;  %v1097_v42 = vld [vmem:[%s1649_s11 + $0x2] ss:$8 sm:$0x3]  ;;  %v1096_v49 = vld [vmem:[%s1649_s11 + $0x1] ss:$8 sm:$0x3] }
  0x32   : > { %v597_v52 = vrot.slane %v1097_v42, %v1460_v26  ;;  %v601_v53 = vrot.slane %v1097_v42, %v1462_v27  ;;  %v1099_v54 = vld [vmem:[%s1649_s11 + $0x5] ss:$8 sm:$0x3]  ;;  %v567_v57 = vrot.slane %v1096_v49, %v1460_v26  ;;  %v571_v60 = vrot.slane %v1096_v49, %v1462_v27  ;;  %v1101_v61 = vld [vmem:[%s1649_s11 + $0x7] ss:$8 sm:$0x3] }
  0x33   : > { %481 = vmatprep.subr.bf16.mxu0 %v1094_v5  ;;  %v653_v0 = vrot.slane %v1099_v54, %v1460_v26  ;;  %vm674_vm9 = vcmp.lt.s32.totalorder %v1458_v25, 113  ;;  %v1102_v33 = vld [vmem:[%s1649_s11 + $0x10] ss:$8 sm:$0x3]  ;;  %vm728_vm10 = vcmp.lt.s32.totalorder %v1458_v25, 111 }
  0x34   : > { %482 = vmatpush1.bf16.msra.mxu0 %v1093_v6  ;;  %v707_v6 = vrot.slane %v1101_v61, %v1460_v26  ;;  %v737_v42 = vrot.slane %v1102_v33, %v1460_v26 }
  0x37   : > { %1095 = vmatmul.mubr.msk.bf16.vlgmr.msra.gmra.mrb[0].mxu0 %vm477_vm0, %v460_v7  ;;  %v711_v7 = vrot.slane %v1101_v61, %v1462_v27  ;;  %vm915_vm0 = vcmask 7168  }
  0x38   : > { %892 = vmatprep.mubr.bf16.mxu0 %v1274_v1  ;;  %v657_v1 = vrot.slane %v1099_v54, %v1462_v27 }
  0xaa   : > { %v465_v8 = vpop.permute.xlu0 %464 }
 0x10a   : > { %v515_v9 = vpop.f32.mrb[0].mxu0 }
 0x10b   : > { %v516_v11 = vadd.f32 %v515_v9, %v465_v8  ;;  %v517_v12 = vpop.f32.mrb[1].mxu0 }
 0x10c   : > { %v518_v13 = vadd.f32 %v517_v12, %v465_v8  ;;  %v519_v14 = vpop.f32.mrb[2].mxu0 }
 0x10d   : > { %vm522_vm1 = vcmp.ge.f32.partialorder %v516_v11, 0.0  ;;  %v525_v15 = vmul.f32 %v1443_v10, %v516_v11  ;;  %v520_v16 = vpop.f32.mrb[3].mxu0 }
 0x10e   : > { %vm523_vm2 = vcmp.ge.f32.partialorder %v518_v13, 0.0  ;;  %v526_v17 = vmul.f32 %v1443_v10, %v518_v13 }
 0x10f   : > { %v527_v18 = vsel %vm522_vm1, %v516_v11, %v525_v15 }
 0x110   : > { %638 = vst [vmem:[#allocation2 + $0x20] sm:$0xf] %v527_v18  ;;  %v528_v19 = vsel %vm523_vm2, %v518_v13, %v526_v17  ;;  %608 = vrot.lane.b32.xlu1 %v527_v18, %s1275_s16  ;;  %554 = vrot.lane.b32.xlu0 %v527_v18, %s1652_s17  ;;  %v1100_v17 = vld [vmem:[%s1649_s11 + $0x6] ss:$8 sm:$0x3] }
 0x111   : > { %639 = vst [vmem:[#allocation2 + $0x28] sm:$0xf] %v528_v19 }
 0x114   : > { %529 = vrot.lane.b32.xlu1 %v527_v18, %s1277_s21  ;;  %610 = vrot.lane.b32.xlu0 %v528_v19, %s1275_s16 }
 0x118   : > { %584 = vrot.lane.b32.xlu1 %v527_v18, %s1278_s22  ;;  %531 = vrot.lane.b32.xlu0 %v528_v19, %s1277_s21  ;;  %s1092_s21 = sld [smem:[#allocation4 + $0x1]] }
 0x11c   : > { %640 = vrot.lane.b32.xlu1 %v527_v18, %s1279_s23  ;;  %586 = vrot.lane.b32.xlu0 %v528_v19, %s1278_s22 }
 0x120   : > { %556 = vrot.lane.b32.xlu1 %v528_v19, %s1652_s17  ;;  %642 = vrot.lane.b32.xlu0 %v528_v19, %s1279_s23  ;;  %s1116_s23 = sshll.u32 %s1379_s8, 9 }
 0x124   : > { %694 = vrot.lane.b32.xlu1 %v527_v18, %s1280_s24  ;;  %696 = vrot.lane.b32.xlu0 %v528_v19, %s1280_s24 }
 0x128   : > { %670 = vrot.lane.b32.xlu1 %v527_v18, %s1281_s25  ;;  %672 = vrot.lane.b32.xlu0 %v528_v19, %s1281_s25 }
 0x12c   : > { %724 = vrot.lane.b32.xlu1 %v527_v18, %s1282_s26  ;;  %726 = vrot.lane.b32.xlu0 %v528_v19, %s1282_s26  ;;  %s1590_s26 = scalar_lea.hbm %s1651_s13, %s1116_s23 }
 0x130   : > { %837 = vperm.xlu0 %1177, %v833_v20   ;;  %768 = vperm.xlu1 %1178, %v765_v21  }
 0x134   : > { %842 = vperm.xlu1 %1178, %v834_v22  }
 0x182   : > { %v609_v29 = vpop.permute.xlu1 %608  ;;  %v555_v30 = vpop.permute.xlu0 %554 }
 0x186   : > { %v530_v34 = vpop.permute.xlu1 %529  ;;  %v611_v35 = vpop.permute.xlu0 %610 }
 0x187   : > { %v613_v36 = vsel %vm612_vm3, %v609_v29, %v611_v35  ;;  %v614_v37 = vsel %vm612_vm3, %v611_v35, %v609_v29 }
 0x188   : > { %v628_v38 = vmul.f32 %v621_v31, %v614_v37  ;;  %v629_v39 = vmul.f32 %v625_v32, %v613_v36  ;;  %v683_v31 = vrot.slane %v1100_v17, %v1460_v26  ;;  %v687_v32 = vrot.slane %v1100_v17, %v1462_v27 }
 0x18a   : > { %v632_v43 = vrot.slane %v628_v38, 4  ;;  %v633_v44 = vrot.slane %v629_v39, 4  ;;  %v585_v45 = vpop.permute.xlu1 %584  ;;  %v532_v46 = vpop.permute.xlu0 %531 }
 0x18b   : > { %v536_v47 = vsel %vm535_vm4, %v530_v34, %v532_v46  ;;  %v537_v48 = vsel %vm535_vm4, %v532_v46, %v530_v34 }
 0x18c   : > { %636 = vst [vmem:[#allocation2 + $0x10] sm:$0xf0] %v632_v43  ;;  %637 = vst [vmem:[#allocation2 + $0x18] sm:$0xf0] %v633_v44  ;;  %v550_v50 = vmul.f32 %v543_v40, %v537_v48  ;;  %v551_v51 = vmul.f32 %v547_v41, %v536_v47  ;;  %v741_v43 = vrot.slane %v1102_v33, %v1462_v27 }
 0x18e   : > { %552 = vst [vmem:[#allocation2] sm:$0xf] %v550_v50  ;;  %553 = vst [vmem:[#allocation2 + $0x8] sm:$0xf] %v551_v51  ;;  %v641_v55 = vpop.permute.xlu1 %640  ;;  %v587_v56 = vpop.permute.xlu0 %586 }
 0x18f   : > { %v589_v58 = vsel %vm588_vm5, %v585_v45, %v587_v56  ;;  %v590_v59 = vsel %vm588_vm5, %v587_v56, %v585_v45 }
 0x190   : > { %v604_v62 = vmul.f32 %v597_v52, %v590_v59  ;;  %v605_v63 = vmul.f32 %v601_v53, %v589_v58 }
 0x192   : > { %606 = vst [vmem:[#allocation2 + $0x10] sm:$0xf] %v604_v62  ;;  %607 = vst [vmem:[#allocation2 + $0x18] sm:$0xf] %v605_v63  ;;  %v557_v2 = vpop.permute.xlu1 %556  ;;  %v643_v5 = vpop.permute.xlu0 %642 }
 0x193   : > { %v559_v8 = vsel %vm558_vm6, %v555_v30, %v557_v2  ;;  %v560_v9 = vsel %vm558_vm6, %v557_v2, %v555_v30  ;;  %v645_v11 = vsel %vm644_vm7, %v641_v55, %v643_v5  ;;  %v646_v12 = vsel %vm644_vm7, %v643_v5, %v641_v55 }
 0x194   : > { %v574_v13 = vmul.f32 %v567_v57, %v560_v9  ;;  %v575_v14 = vmul.f32 %v571_v60, %v559_v8  ;;  %v660_v15 = vmul.f32 %v653_v0, %v645_v11  ;;  %v661_v16 = vmul.f32 %v657_v1, %v646_v12  ;;  %v764_v1 = vld [vmem:[%s1641_s3] sm:$0x3] }
 0x196   : > { %v578_v18 = vrot.slane %v574_v13, 4  ;;  %v579_v19 = vrot.slane %v575_v14, 4  ;;  %v664_v20 = vrot.slane %v660_v15, 4  ;;  %v665_v21 = vrot.slane %v661_v16, 4  ;;  %v695_v22 = vpop.permute.xlu1 %694  ;;  %v697_v23 = vpop.permute.xlu0 %696 }
 0x197   : > { %v699_v24 = vsel %vm698_vm8, %v695_v22, %v697_v23  ;;  %v700_v28 = vsel %vm698_vm8, %v697_v23, %v695_v22 }
 0x198   : > { %582 = vst [vmem:[#allocation2] sm:$0xf0] %v578_v18  ;;  %583 = vst [vmem:[#allocation2 + $0x8] sm:$0xf0] %v579_v19  ;;  %v714_v29 = vmul.f32 %v707_v6, %v699_v24  ;;  %v715_v30 = vmul.f32 %v711_v7, %v700_v28  ;;  %v1181_v19 = vld [vmem:[%s1643_s5] sm:$0xff]  }
 0x199   : > { %668 = vst [vmem:[#allocation2 + $0x20] sm:$0xf0] %v664_v20  ;;  %669 = vst [vmem:[#allocation2 + $0x28] sm:$0xf0] %v665_v21  ;;  %v751_v46 = vld [vmem:[#allocation2 + $0x18] sm:$0xff]  ;;  %v750_v51 = vld [vmem:[#allocation2 + $0x10] sm:$0xff] }
 0x19a   : > { %v718_v34 = vrot.slane %v714_v29, 4  ;;  %v719_v35 = vrot.slane %v715_v30, 4  ;;  %v671_v36 = vpop.permute.xlu1 %670  ;;  %v673_v37 = vpop.permute.xlu0 %672 }
 0x19b   : > { %v675_v38 = vsel %vm674_vm9, %v671_v36, %v673_v37  ;;  %v676_v39 = vsel %vm674_vm9, %v673_v37, %v671_v36 }
 0x19c   : > { %722 = vst [vmem:[#allocation2 + $0x30] sm:$0xf0] %v718_v34  ;;  %723 = vst [vmem:[#allocation2 + $0x38] sm:$0xf0] %v719_v35  ;;  %v690_v40 = vmul.f32 %v683_v31, %v675_v38  ;;  %v691_v41 = vmul.f32 %v687_v32, %v676_v39  ;;  %v911_v35 = vld [vmem:[%s1645_s7] sm:$0xff]  ;;  %v912_v38 = vld [vmem:[%s1645_s7 + $0x8] sm:$0xff] }
 0x19e   : > { %692 = vst [vmem:[#allocation2 + $0x30] sm:$0xf] %v690_v40  ;;  %693 = vst [vmem:[#allocation2 + $0x38] sm:$0xf] %v691_v41  ;;  %v725_v44 = vpop.permute.xlu1 %724  ;;  %v727_v45 = vpop.permute.xlu0 %726 }
 0x19f   : > { %v729_v47 = vsel %vm728_vm10, %v725_v44, %v727_v45  ;;  %v730_v48 = vsel %vm728_vm10, %v727_v45, %v725_v44  ;;  %v749_v49 = vld [vmem:[#allocation2 + $0x8] sm:$0xff]  ;;  %v748_v50 = vld [vmem:[#allocation2] sm:$0xff] }
 0x1a0   : > { %v744_v52 = vmul.f32 %v737_v42, %v729_v47  ;;  %v745_v25 = vmul.f32 %v741_v43, %v730_v48  ;;  %v759_v53 = vpack.c.bf16 %v751_v46, %v749_v49  ;;  %v758_v54 = vpack.c.bf16 %v750_v51, %v748_v50  ;;  %v753_v55 = vld [vmem:[#allocation2 + $0x28] sm:$0xff]  ;;  %v752_v56 = vld [vmem:[#allocation2 + $0x20] sm:$0xff]  ;;  %v925_v51 = vld [vmem:[#allocation3] sm:$0x1] }
 0x1a2   : > { %746 = vst [vmem:[#allocation2 + $0x40] sm:$0xf] %v744_v52  ;;  %747 = vst [vmem:[#allocation2 + $0x48] sm:$0xf] %v745_v25  ;;  %782 = vmatprep.subr.bf16.mxu1 %v759_v53  ;;  %v928_v25 = vstv %s1092_s21  ;;  %s447_s21 = sand.u32 1, %s1263_s28  }
 0x1a3   : > { %783 = vmatpush1.bf16.msra.mxu1 %v758_v54  ;;  %s1089_s22 = sshll.u32 %s447_s21, 5  ;;  %s1596_s14 = scalar_lea.sflag [#allocation5], %s447_s21 }
 0x1a4   : > { %s449_s24 = scalar_lea.vmem [#allocation7], %s1089_s22  ;;  %s1283_s22 = smov [#allocation7]  }
 0x1a5   : > { %v755_v27 = vld [vmem:[#allocation2 + $0x38] sm:$0xff]  ;;  %v754_v57 = vld [vmem:[#allocation2 + $0x30] sm:$0xff]  ;;  %s1009_s25 = sshll.u32 %s449_s24, 4  ;;  %s1209_s23 = sshll.u32 %s1283_s22, 4  ;;  %s1592_s25 = int_to_ptr.vmem [resolvable:$true] %s1009_s25  ;;  %s1210_s23 = int_to_ptr.vmem [resolvable:$false] %s1209_s23 }
 0x1a6   : > { %v761_v58 = vpack.c.bf16 %v755_v27, %v753_v55  ;;  %v760_v59 = vpack.c.bf16 %v754_v57, %v752_v56  ;;  %v931_v55 = vld [vmem:[%s1647_s9] sm:$0xff]  ;;  %v932_v27 = vld [vmem:[%s1647_s9 + $0x8] sm:$0xff]  ;;  %s1205_s16 = scalar_lea.vmem %s1592_s25, 512  ;;  %s1211_s0 = scalar_lea.vmem %s1210_s23, 1024 }
 0x1a7   : > { %p1206_p9 = scmp.ne.s32.totalorder %s1592_s25, %s1205_s16  ;;  %p1212_p13 = scmp.lt.s32.totalorder %s1592_s25, %s1210_s23 }
 0x1a8   : > { %784 = vmatprep.subr.bf16.mxu1 %v761_v58  ;;  %v941_v58 = vld [vmem:[%s1648_s10] sm:$0xff]  ;;  %p1213_p0 = scmp.lt.s32.totalorder %s1211_s0, %s1205_s16 }
 0x1a9   : > { %785 = vmatpush1.bf16.msra.mxu1 %v760_v59  ;;  %v757_v60 = vld [vmem:[#allocation2 + $0x48] sm:$0xf]  ;;  %v756_v61 = vld [vmem:[#allocation2 + $0x40] sm:$0xf]  ;;  %p1207_p10 = pnand %p1206_p9, %p1396_p5 }
 0x1aa   : > { %v763_v62 = vpack.c.bf16 %v757_v60, %v757_v60  ;;  %v762_v63 = vpack.c.bf16 %v756_v61, %v756_v61  ;;  %v942_v59 = vld [vmem:[%s1648_s10 + $0x8] sm:$0xff]  ;;  %p1214_p1 = por %p1213_p0, %p1212_p13 }
 0x1ab   : > { %p1208_p12 = pneg %p1207_p10 }
 0x1ac   : > { %1103 = vmatprep.subr.msk.bf16.mxu1 %vm775_vm11, %v763_v62  ;;  %v777_v0 = vsel %vm775_vm11, %v762_v63, 0 }
 0x1ad   : > { %787 = vmatpush1.bf16.msra.mxu1 %v777_v0  ;;  %p1215_p2 = pnand %p1214_p1, %p1208_p12 }
 0x1af   : > { %v769_v2 = vpop.permute.xlu1 %768  ;;  %v838_v20 = vpop.permute.xlu0 %837 }
 0x1b0   : > { %1104 = vmatmul.mubr.msk.bf16.vlgmr.msra.gmra.mrb[0].mxu1 %vm771_vm12, %v764_v1 }
 0x1b3   : > { %v843_v24 = vpop.permute.xlu1 %842 }
 0x283   : > { %v816_v5 = vpop.f32.mrb[0].mxu1 }
 0x284   : > { %v817_v6 = vadd.f32 %v816_v5, %v769_v2  ;;  %v818_v7 = vpop.f32.mrb[1].mxu1 }
 0x285   : > { %v819_v8 = vadd.f32 %v818_v7, %v769_v2  ;;  %v820_v9 = vpop.f32.mrb[2].mxu1 }
 0x286   : > { %vm823_vm13 = vcmp.ge.f32.partialorder %v817_v6, 0.0  ;;  %v825_v11 = vmul.f32 %v817_v6, %v1443_v10  ;;  %v821_v12 = vpop.f32.mrb[3].mxu1  ;;  %v971_v9 = vunpack.c.l.bf16 %v1432_v3 }
 0x287   : > { %vm824_vm14 = vcmp.ge.f32.partialorder %v819_v8, 0.0  ;;  %v826_v13 = vmul.f32 %v819_v8, %v1443_v10  ;;  %v973_v12 = vunpack.c.l.bf16 %v1434_v4 }
 0x288   : > { %v827_v14 = vsel %vm823_vm13, %v817_v6, %v825_v11  ;;  %v972_v11 = vunpack.c.h.bf16 %v1432_v3 }
 0x289   : > { %v831_v15 = vpack.c.bf16 %v827_v14, %v827_v14  ;;  %v828_v16 = vsel %vm824_vm14, %v819_v8, %v826_v13  ;;  %v974_v13 = vunpack.c.h.bf16 %v1434_v4 }
 0x28a   : > { %v832_v17 = vpack.c.bf16 %v828_v16, %v828_v16 }
 0x28b   : > { %v855_v18 = vsel %vm775_vm11, %v831_v15, 0 }
 0x28c   : > { %1106 = vmatprep.subr.msk.bf16.mxu0 %vm775_vm11, %v832_v17 }
 0x28d   : > { %861 = vmatpush1.bf16.msra.mxu0 %v855_v18 }
 0x290   : > { %1107 = vmatmul.mubr.msk.bf16.vlgmr.msra.gmra.mrb[4].mxu0 %vm850_vm15, %v1181_v19 }
 0x363   : > { %v894_v21 = vpop.f32.mrb[4].mxu0 }
 0x364   : > { %v1540_v22 = vadd.f32 %v894_v21, %v838_v20  ;;  %v896_v23 = vpop.f32.mrb[5].mxu0 }
 0x365   : > { %v1542_v28 = vadd.f32 %v896_v23, %v838_v20  ;;  %v898_v29 = vpop.f32.mrb[6].mxu0 }
 0x366   : > { %v1544_v30 = vadd.f32 %v898_v29, %v843_v24  ;;  %v900_v31 = vpop.f32.mrb[7].mxu0 }
 0x367   : > { %v1546_v32 = vadd.f32 %v900_v31, %v843_v24  ;;  %v903_v33 = vadd.f32 %v1542_v28, %v1540_v22 }
 0x369   : > { %904 = vadd.xlane.f32.xlu0 %v903_v33  ;;  %v906_v34 = vadd.f32 %v1546_v32, %v1544_v30 }
 0x36b   : > { %907 = vadd.xlane.f32.xlu1 %v906_v34 }
 0x3f6   : > { %v905_v36 = vpop.xlane.xlu0 %904 }
 0x3f7   : > { %v909_v37 = vmul.f32 0.00390625, %v905_v36 }
 0x3f8   : > { %v908_v39 = vpop.xlane.xlu1 %907 }
 0x3f9   : > { %v913_v40 = vmul.f32 %v911_v35, %v909_v37  ;;  %v910_v41 = vmul.f32 0.00390625, %v908_v39 }
 0x3fb   : > { %v914_v42 = vmul.f32 %v912_v38, %v910_v41  ;;  %v916_v43 = vsel %vm915_vm0, %v913_v40, 0.0 }
 0x3fd   : > { %v917_v44 = vsel %vm915_vm0, %v914_v42, 0.0 }
 0x3fe   : > { %v918_v45 = vadd.f32 %v917_v44, %v916_v43 }
 0x400   : > { %v919_v46 = vrot.slane %v918_v45, 4 }
 0x402   : > { %v920_v47 = vadd.f32 %v919_v46, %v918_v45 }
 0x404   : > { %v921_v48 = vrot.slane %v920_v47, 2 }
 0x406   : > { %v922_v49 = vadd.f32 %v921_v48, %v920_v47 }
 0x408   : > { %v923_v50 = vrot.slane %v922_v49, 1 }
 0x40a   : > { %v924_v52 = vadd.f32 %v923_v50, %v922_v49 }
 0x40c   : > { %v926_v53 = vadd.f32 %v925_v51, %v924_v52 }
 0x40e   : > { %vm927_vm1 = vcmp.ge.f32.partialorder %v926_v53, 0.0  ;;  %v929_v54 = vmul.f32 %v928_v25, %v926_v53 }
 0x410   : > { %v930_v56 = vsel %vm927_vm1, %v926_v53, %v929_v54 }
 0x411   : > { %v936_v57 = vrot.slane %v930_v56, %v1460_v26 }
 0x413   : > { %v937_v60 = vmul.f32 %v936_v57, %v931_v55  ;;  %v938_v61 = vmul.f32 %v936_v57, %v932_v27 }
 0x415   : > { %v943_v62 = vadd.f32 %v941_v58, %v937_v60  ;;  %v944_v63 = vadd.f32 %v942_v59, %v938_v61 }
 0x417   : > { %v1108_v0 = vmul.f32 -1.442695, %v943_v62  ;;  %v1109_v1 = vmul.f32 -1.442695, %v944_v63 }
 0x419   : > { %1182 = vpow2.f32 %v1108_v0 }
 0x41a   : > { %1184 = vpow2.f32 %v1109_v1 }
 0x423   : > { %v1183_v2 = vpop.eup %1182 }
 0x424   : > { %v1185_v26 = vpop.eup %1184  ;;  %v951_v5 = vadd.f32 1.0, %v1183_v2 }
 0x425   : > { %v952_v6 = vadd.f32 1.0, %v1185_v26 }
 0x426   : > { %1186 = vrcp.f32 %v951_v5 }
 0x427   : > { %1188 = vrcp.f32 %v952_v6 }
 0x430   : > { %v1187_v7 = vpop.eup %1186 }
 0x431   : > { %v1189_v8 = vpop.eup %1188  ;;  %959 = vperm.xlu0 %1177, %v1187_v7  }
 0x432   : > { %964 = vperm.xlu1 %1178, %v1189_v8  }
 0x4b0   : > { %v960_v14 = vpop.permute.xlu0 %959 }
 0x4b1   : > { %v965_v15 = vpop.permute.xlu1 %964  ;;  %v967_v16 = vmul.f32 %v960_v14, %v1540_v22  ;;  %v968_v17 = vmul.f32 %v960_v14, %v1542_v28 }
 0x4b2   : > { %v969_v18 = vmul.f32 %v965_v15, %v1544_v30  ;;  %v970_v19 = vmul.f32 %v965_v15, %v1546_v32 }
 0x4b3   : > { %v975_v20 = vadd.f32 %v971_v9, %v967_v16  ;;  %v976_v21 = vadd.f32 %v972_v11, %v968_v17 }
 0x4b4   : > { %v977_v23 = vadd.f32 %v973_v12, %v969_v18  ;;  %v978_v24 = vadd.f32 %v974_v13, %v970_v19 }
 0x4b5   : > { %vm979_vm2 = vcmp.ge.f32.partialorder %v975_v20, 0.0  ;;  %vm980_vm3 = vcmp.ge.f32.partialorder %v976_v21, 0.0  ;;  %v983_v3 = vmul.f32 %v975_v20, %v1443_v10  ;;  %v984_v4 = vmul.f32 %v976_v21, %v1443_v10 }
 0x4b6   : > { %vm981_vm4 = vcmp.ge.f32.partialorder %v977_v23, 0.0  ;;  %vm982_vm5 = vcmp.ge.f32.partialorder %v978_v24, 0.0  ;;  %v985_v22 = vmul.f32 %v977_v23, %v1443_v10  ;;  %v986_v28 = vmul.f32 %v978_v24, %v1443_v10 }
 0x4b7   : > { %v987_v29 = vsel %vm979_vm2, %v975_v20, %v983_v3  ;;  %v988_v30 = vsel %vm980_vm3, %v976_v21, %v984_v4 }
 0x4b8   : > { %v989_v31 = vsel %vm981_vm4, %v977_v23, %v985_v22  ;;  %v990_v32 = vsel %vm982_vm5, %v978_v24, %v986_v28  ;;  %991 = vst [vmem:[%s449_s24] sm:$0xff] %v987_v29  ;;  %992 = vst [vmem:[%s449_s24 + $0x8] sm:$0xff] %v988_v30 }
 0x4b9   : > { %993 = vst [vmem:[%s449_s24 + $0x10] sm:$0xff] %v989_v31  ;;  %994 = vst [vmem:[%s449_s24 + $0x18] sm:$0xff] %v990_v32 }
 0x4ba   : > { %1218 = shalt.err (!%p1215_p2)
}
 0x4bb   : > { %s1219_s21 = scalar_lea.hbm %s1590_s26, 512  ;;  %s1223_s22 = scalar_lea.hbm %s1651_s13, 1024 }
 0x4bc   : > { %p1220_p3 = scmp.ne.s32.totalorder %s1590_s26, %s1219_s21  ;;  %p1224_p8 = scmp.lt.u32.totalorder %s1590_s26, %s1651_s13 }
 0x4bd   : > { %p1225_p11 = scmp.lt.u32.totalorder %s1223_s22, %s1219_s21  ;;  %p1227_p10 = scmp.lt.u32.totalorder %s1219_s21, %s1590_s26 }
 0x4be   : > { %p1221_p4 = pnand %p1220_p3, %p1396_p5 }
 0x4bf   : > { %p1226_p9 = por %p1225_p11, %p1224_p8 }
 0x4c0   : > { %p1222_p7 = pneg %p1221_p4 }
 0x4c1   : > { %p1228_p12 = por %p1227_p10, %p1226_p9 }
 0x4c3   : > { %p1229_p13 = pnand %p1228_p12, %p1222_p7 }
 0x4c5   : > { %1232 = shalt.err (!%p1229_p13)
}
 0x4c6   : > { %s1284_s16 = smov 256   ;;  %s1658_s0 = smov 16  }
 0x4c7   : > { %1121 = dma.vmem_to_hbm [thread:$0]  (%p1396_p5), %s1592_s25, 512, %s1590_s26, %s1596_s14, %s1284_s16, %s1284_s16, %s1658_s0  }
 0x4c8 PF: > { %p1133_p0 = scmp.ge.s32.totalorder %s1271_s30, 2  ;;  %s1024_s17 = sand.u32 1, %s1259_s27  }
 0x4c9   : > { %s1025_s21 = scalar_lea.sflag [#allocation5], %s1024_s17 }
 0x4ca   : > { %p1128_p1 = pnand %p1133_p0, %p1400_p6 }
 0x4cc   : > { %1254 = dma.done.wait (!%p1128_p1), %s1025_s21, 512  }
 0x4cd   : > { %1256 = vsyncadd (!%p1128_p1), %s1025_s21, 4294966784  ;;  %p26_p2 = scmp.ge.s32.totalorder %s1383_s15, 4   ;;  %s1659_s27 = smov %s1263_s28 }
 0x4ce   : > { %s1660_s28 = smov %s1267_s29  ;;  %s1661_s29 = smov %s1394_s18 }
 0x4cf   : > { %s1662_s30 = smov %s1383_s15  ;;  %28 = sbr.rel (!%p26_p2) target bundleno = 7 (0x7), region = 119 }
 0x4d6   :  { %1030 = vsyncpa [#allocation5], 1 }
 0x4d7   :  { %1032 = vsyncpa [#allocation5 + $0x1], 1 }
 0x4d8   :  { %1033 = vsyncpa [#allocation6], 1 }
 0x4d9   :  { %1035 = vsyncpa [#allocation6 + $0x1], 1 }

</bundles_post_ra>
